<compile_context>
chip_gen: v7x
topology: tpu7x:2x2x1
jax: 0.10.0
libtpu: 0.0.40
codegen_flags: <defaults>
</compile_context>

<pallas_src>
import functools

import jax
import jax.numpy as jnp
from jax.experimental import pallas as pl
from jax.experimental.pallas import tpu as pltpu


LANE = 128
SUBLANE = 8
_MIN_TB = 128      # batch-tile floor when splitting (below this, grid overhead dominates)
_MAX_TB = 1024     # batch-tile cap (VMEM stays a few MiB at typical hidden dims)
_NEG_LARGE = -1e30  # bias value for padded logit columns (exp underflows to 0, never wins max)


def _round_up(x, m):
    return ((x + m - 1) // m) * m


def actor_kernel(x_ref, w1_ref, b1_ref, w2_ref, b2_ref, w3_ref, b3_ref, pi_ref,
                 *, approx_reciprocal):
    """One batch tile of the actor MLP.  All feature dims are lane-padded to 128 multiples.

    x already matches the weight dtype (wrapper casts while padding), so fc1 needs no cast.
    Matmuls accumulate in f32; all elementwise math stays f32 (v5e VPU/EUP have no bf16).
    """
    # fc1 + ReLU
    h1 = jnp.dot(x_ref[...], w1_ref[...], preferred_element_type=jnp.float32) + b1_ref[...]
    h1 = jnp.maximum(h1, 0.0)

    # fc2 + ReLU
    h2 = jnp.dot(h1.astype(w2_ref.dtype), w2_ref[...],
                 preferred_element_type=jnp.float32) + b2_ref[...]
    h2 = jnp.maximum(h2, 0.0)

    # pi head.  Padded action columns carry a host-side -1e30 bias (padded w3 columns are
    # zero), so no in-kernel iota/select mask is needed before the softmax.
    logits = jnp.dot(h2.astype(w3_ref.dtype), w3_ref[...],
                     preferred_element_type=jnp.float32) + b3_ref[...]

    # Max-stabilized softmax over dim=1 (lane axis).
    m = jnp.max(logits, axis=1, keepdims=True)
    e = jnp.exp(logits - m)
    denom = jnp.sum(e, axis=1, keepdims=True)
    pi_ref[...] = (e * pl.reciprocal(denom, approx=approx_reciprocal)).astype(pi_ref.dtype)


def _pad2(a, rows, cols, dtype):
    a = a.astype(dtype)
    return jnp.pad(a, ((0, rows - a.shape[0]), (0, cols - a.shape[1])))


def _choose_tb(batch):
    """Batch-tile rows: big tiles amortize the ~0.35us/grid-step overhead; for moderate/large
    batches guarantee >= 2 grid steps with an even step count so v7x's two TensorCores both
    stay busy, each tile >= _MIN_TB rows."""
    b_aligned = _round_up(batch, SUBLANE)
    if b_aligned < 2 * _MIN_TB:
        return b_aligned                              # small batch: a single tile
    tb = min(_MAX_TB, _round_up(pl.cdiv(b_aligned, 2), SUBLANE))
    steps = pl.cdiv(b_aligned, tb)
    if steps > 1 and steps % 2 == 1:
        steps += 1                                    # even step count -> no idle tail core
    return max(_MIN_TB, _round_up(pl.cdiv(b_aligned, steps), SUBLANE))


def _const_spec(shape, buffer_count):
    """BlockSpec for a VMEM-resident operand (same block revisited every grid step)."""
    if buffer_count is None:
        return pl.BlockSpec(shape, lambda i: (0, 0))
    # Opt-in single/multi buffering of the resident weights (perf-review item); halves their
    # VMEM footprint with buffer_count=1 when hidden dims grow toward 1-2K padded.
    return pl.BlockSpec(shape, lambda i: (0, 0), pipeline_mode=pl.Buffered(buffer_count))


def actor_forward(state, params, *, weight_dtype=jnp.float32, tb=None,
                  approx_reciprocal=False, weight_buffer_count=None):
    """state: (B, input_dims) f32; params: dict of weights/biases (see init_params).

    weight_dtype: jnp.float32 (exact parity, default) or jnp.bfloat16 (halves weight + x
    HBM/VMEM bytes; valid on v5e/v6e/v7x since elementwise math stays f32).
    approx_reciprocal: True routes the softmax denominator to the EUP approx reciprocal;
    default False keeps exact row-normalization (probabilities usually feed log-prob math).
    """
    w1, b1, w2, b2, w3, b3 = (params["w1"], params["b1"], params["w2"],
                              params["b2"], params["w3"], params["b3"])
    B, d_in = state.shape
    h1_dim, h2_dim, n_actions = w1.shape[1], w2.shape[1], w3.shape[1]

    # Lane-pad all feature dims to multiples of 128 (lane-dense matmuls + unmasked vst output).
    d_in_p = _round_up(d_in, LANE)
    h1_p = _round_up(h1_dim, LANE)
    h2_p = _round_up(h2_dim, LANE)
    a_p = _round_up(n_actions, LANE)

    if tb is None:
        tb = _choose_tb(B)
    b_p = _round_up(B, tb)

    f32 = jnp.float32
    # x is cast to the weight dtype while padding (bf16 path: halves the dominant input DMA
    # and removes the per-tile f32->bf16 cast; f32 path: unchanged).
    x_p = _pad2(state, b_p, d_in_p, weight_dtype)
    w1_p = _pad2(w1, d_in_p, h1_p, weight_dtype)
    w2_p = _pad2(w2, h1_p, h2_p, weight_dtype)
    w3_p = _pad2(w3, h2_p, a_p, weight_dtype)
    b1_p = _pad2(b1, 1, h1_p, f32)
    b2_p = _pad2(b2, 1, h2_p, f32)
    # Host-side logit mask: padded action columns of the pi bias get -1e30 (padded w3 columns
    # are zero, so padded logits == padded bias).  Real columns always dominate the row max
    # and padded exps underflow to 0.
    b3_p = jnp.full((1, a_p), _NEG_LARGE, f32)
    b3_p = b3_p.at[:, :n_actions].set(b3.astype(f32).reshape(1, n_actions))

    grid = (b_p // tb,)
    kernel = functools.partial(actor_kernel, approx_reciprocal=approx_reciprocal)

    # VMEM footprint estimate: double-buffered x/out tiles, (double-buffered) resident weights,
    # and f32 intermediates.  Only force a limit when it would exceed v5e's 16 MiB default
    # scoped limit; cap at v7x's 64 MiB physical VMEM.
    w_itemsize = jnp.dtype(weight_dtype).itemsize
    weight_elems = d_in_p * h1_p + h1_p * h2_p + h2_p * a_p
    bias_elems = h1_p + h2_p + a_p
    wbuf = 1 if weight_buffer_count == 1 else 2
    vmem_est = (2 * tb * d_in_p * w_itemsize                 # x tile (double-buffered)
                + 2 * tb * a_p * 4                           # out tile (double-buffered)
                + wbuf * (weight_elems * w_itemsize + bias_elems * 4)
                + tb * (h1_p + h2_p + 2 * a_p) * 4)          # f32 intermediates
    vmem_limit = None
    if vmem_est > 12 * (1 << 20):
        vmem_limit = min(vmem_est * 3 // 2 + (2 << 20), 64 << 20)

    cost = pl.CostEstimate(
        flops=2 * b_p * weight_elems,
        transcendentals=b_p * (a_p + 1),                     # exp per logit + 1 recip per row
        bytes_accessed=(b_p * d_in_p * w_itemsize            # x
                        + weight_elems * w_itemsize + bias_elems * 4
                        + b_p * a_p * 4))                    # out

    out = pl.pallas_call(
        kernel,
        out_shape=jax.ShapeDtypeStruct((b_p, a_p), jnp.float32),
        grid=grid,
        in_specs=[
            pl.BlockSpec((tb, d_in_p), lambda i: (i, 0)),    # x: tiled over batch
            _const_spec((d_in_p, h1_p), weight_buffer_count),  # weights/biases: VMEM-resident
            _const_spec((1, h1_p), weight_buffer_count),
            _const_spec((h1_p, h2_p), weight_buffer_count),
            _const_spec((1, h2_p), weight_buffer_count),
            _const_spec((h2_p, a_p), weight_buffer_count),
            _const_spec((1, a_p), weight_buffer_count),
        ],
        out_specs=pl.BlockSpec((tb, a_p), lambda i: (i, 0)),  # lane-dense output slab
        compiler_params=pltpu.CompilerParams(
            dimension_semantics=("parallel",),               # shard batch tiles across TCs
            vmem_limit_bytes=vmem_limit),
        cost_estimate=cost,
    )(x_p, w1_p, b1_p, w2_p, b2_p, w3_p, b3_p)

    return out[:B, :n_actions]


def init_params(key, input_dims, fc1_dims, fc2_dims, n_actions):
    """Deterministic synthetic init mimicking nn.Linear's U(-1/sqrt(fan_in), +1/sqrt(fan_in))."""
    ks = jax.random.split(key, 6)

    def linear(kw, kb, fan_in, fan_out):
        bound = 1.0 / jnp.sqrt(jnp.float32(fan_in))
        # Stored as (in, out): equals PyTorch weight (out, in) transposed.
        w = jax.random.uniform(kw, (fan_in, fan_out), jnp.float32, -bound, bound)
        b = jax.random.uniform(kb, (1, fan_out), jnp.float32, -bound, bound)
        return w, b

    w1, b1 = linear(ks[0], ks[1], input_dims, fc1_dims)
    w2, b2 = linear(ks[2], ks[3], fc1_dims, fc2_dims)
    w3, b3 = linear(ks[4], ks[5], fc2_dims, n_actions)
    return {"w1": w1, "b1": b1, "w2": w2, "b2": b2, "w3": w3, "b3": b3}


if __name__ == "__main__":
    # Small shapes consistent with the module's forward (state: (batch, input_dims)).
    batch, input_dims, fc1_dims, fc2_dims, n_actions = 8, 32, 64, 64, 16

    key = jax.random.PRNGKey(0)
    k_state, k_params, k_big = jax.random.split(key, 3)
    state = jax.random.normal(k_state, (batch, input_dims), jnp.float32)
    params = init_params(k_params, input_dims, fc1_dims, fc2_dims, n_actions)

    def reference(x, p):
        h1 = jnp.maximum(x @ p["w1"] + p["b1"], 0.0)
        h2 = jnp.maximum(h1 @ p["w2"] + p["b2"], 0.0)
        return jax.nn.softmax(h2 @ p["w3"] + p["b3"], axis=1)

    # f32-weight path (exact parity with the reference), small batch -> single tile.
    pi = jax.block_until_ready(actor_forward(state, params))
    assert pi.shape == (batch, n_actions)
    assert jnp.allclose(jnp.sum(pi, axis=1), 1.0, atol=1e-4), "row sums off"
    assert jnp.allclose(pi, reference(state, params), atol=5e-3), "mismatch vs reference"

    # Moderate batch -> multiple (even) grid steps + padded trailing batch rows.
    big_state = jax.random.normal(k_big, (300, input_dims), jnp.float32)
    pi_big = jax.block_until_ready(actor_forward(big_state, params))
    assert pi_big.shape == (300, n_actions)
    assert jnp.allclose(jnp.sum(pi_big, axis=1), 1.0, atol=1e-4), "big-batch row sums off"
    assert jnp.allclose(pi_big, reference(big_state, params), atol=5e-3), "big-batch mismatch"

    # bf16-weight fast path (x + weights stream as bf16, f32 accumulate/elementwise).
    pi_bf16 = jax.block_until_ready(actor_forward(state, params, weight_dtype=jnp.bfloat16))
    assert pi_bf16.shape == (batch, n_actions)
    assert jnp.allclose(jnp.sum(pi_bf16, axis=1), 1.0, atol=1e-3)
    assert bool(jnp.all(jnp.isfinite(pi_bf16)))

    print("KERNEL_OK")
</pallas_src>

<mosaic_0001>
module attributes {stable_mosaic.version = 11 : i64} {
  func.func @actor_kernel(%arg0: i32, %arg1: memref<8x128xf32, #tpu.memory_space<vmem>>, %arg2: memref<128x128xf32, #tpu.memory_space<vmem>>, %arg3: memref<1x128xf32, #tpu.memory_space<vmem>>, %arg4: memref<128x128xf32, #tpu.memory_space<vmem>>, %arg5: memref<1x128xf32, #tpu.memory_space<vmem>>, %arg6: memref<128x128xf32, #tpu.memory_space<vmem>>, %arg7: memref<1x128xf32, #tpu.memory_space<vmem>>, %arg8: memref<8x128xf32, #tpu.memory_space<vmem>>) attributes {dimension_semantics = [#tpu.dimension_semantics<parallel>], iteration_bounds = array<i64: 1>, scalar_prefetch = 0 : i64, scratch_operands = 0 : i64, tpu.core_type = #tpu.core_type<tc>, window_params = [{transform_indices = @transform_0, window_bounds = array<i64: 8, 128>}, {pipeline_mode = #tpu.pipeline_mode<synchronous>, transform_indices = @transform_1, window_bounds = array<i64: 128, 128>}, {pipeline_mode = #tpu.pipeline_mode<synchronous>, transform_indices = @transform_2, window_bounds = array<i64: 1, 128>}, {pipeline_mode = #tpu.pipeline_mode<synchronous>, transform_indices = @transform_3, window_bounds = array<i64: 128, 128>}, {pipeline_mode = #tpu.pipeline_mode<synchronous>, transform_indices = @transform_4, window_bounds = array<i64: 1, 128>}, {pipeline_mode = #tpu.pipeline_mode<synchronous>, transform_indices = @transform_5, window_bounds = array<i64: 128, 128>}, {pipeline_mode = #tpu.pipeline_mode<synchronous>, transform_indices = @transform_6, window_bounds = array<i64: 1, 128>}, {transform_indices = @transform_7, window_bounds = array<i64: 8, 128>}]} {
    %c0 = arith.constant 0 : index
    %c0_0 = arith.constant 0 : index
    %0 = vector.load %arg1[%c0, %c0_0] : memref<8x128xf32, #tpu.memory_space<vmem>>, vector<8x128xf32>
    %c0_1 = arith.constant 0 : index
    %c0_2 = arith.constant 0 : index
    %1 = vector.load %arg2[%c0_1, %c0_2] : memref<128x128xf32, #tpu.memory_space<vmem>>, vector<128x128xf32>
    %cst = arith.constant dense<0.000000e+00> : vector<8x128xf32>
    %2 = tpu.matmul %0, %1, %cst {dimension_numbers = #tpu.dot_dimension_numbers<[1], [0], [0], [1], [0, 0, 1, 1], [], []>} : vector<8x128xf32>, vector<128x128xf32>, vector<8x128xf32> -> vector<8x128xf32>
    %c0_3 = arith.constant 0 : index
    %c0_4 = arith.constant 0 : index
    %3 = vector.load %arg3[%c0_3, %c0_4] : memref<1x128xf32, #tpu.memory_space<vmem>>, vector<1x128xf32>
    %4 = vector.broadcast %3 : vector<1x128xf32> to vector<8x128xf32>
    %5 = arith.addf %2, %4 : vector<8x128xf32>
    %cst_5 = arith.constant 0.000000e+00 : f32
    %6 = vector.broadcast %cst_5 : f32 to vector<8x128xf32>
    %7 = arith.maximumf %5, %6 : vector<8x128xf32>
    %c0_6 = arith.constant 0 : index
    %c0_7 = arith.constant 0 : index
    %8 = vector.load %arg4[%c0_6, %c0_7] : memref<128x128xf32, #tpu.memory_space<vmem>>, vector<128x128xf32>
    %cst_8 = arith.constant dense<0.000000e+00> : vector<8x128xf32>
    %9 = tpu.matmul %7, %8, %cst_8 {dimension_numbers = #tpu.dot_dimension_numbers<[1], [0], [0], [1], [0, 0, 1, 1], [], []>} : vector<8x128xf32>, vector<128x128xf32>, vector<8x128xf32> -> vector<8x128xf32>
    %c0_9 = arith.constant 0 : index
    %c0_10 = arith.constant 0 : index
    %10 = vector.load %arg5[%c0_9, %c0_10] : memref<1x128xf32, #tpu.memory_space<vmem>>, vector<1x128xf32>
    %11 = vector.broadcast %10 : vector<1x128xf32> to vector<8x128xf32>
    %12 = arith.addf %9, %11 : vector<8x128xf32>
    %cst_11 = arith.constant 0.000000e+00 : f32
    %13 = vector.broadcast %cst_11 : f32 to vector<8x128xf32>
    %14 = arith.maximumf %12, %13 : vector<8x128xf32>
    %c0_12 = arith.constant 0 : index
    %c0_13 = arith.constant 0 : index
    %15 = vector.load %arg6[%c0_12, %c0_13] : memref<128x128xf32, #tpu.memory_space<vmem>>, vector<128x128xf32>
    %cst_14 = arith.constant dense<0.000000e+00> : vector<8x128xf32>
    %16 = tpu.matmul %14, %15, %cst_14 {dimension_numbers = #tpu.dot_dimension_numbers<[1], [0], [0], [1], [0, 0, 1, 1], [], []>} : vector<8x128xf32>, vector<128x128xf32>, vector<8x128xf32> -> vector<8x128xf32>
    %c0_15 = arith.constant 0 : index
    %c0_16 = arith.constant 0 : index
    %17 = vector.load %arg7[%c0_15, %c0_16] : memref<1x128xf32, #tpu.memory_space<vmem>>, vector<1x128xf32>
    %18 = vector.broadcast %17 : vector<1x128xf32> to vector<8x128xf32>
    %19 = arith.addf %16, %18 : vector<8x128xf32>
    %cst_17 = arith.constant dense<0xFF800000> : vector<8xf32>
    %20 = vector.multi_reduction <maximumf>, %19, %cst_17 [1] : vector<8x128xf32> to vector<8xf32>
    %21 = vector.shape_cast %20 : vector<8xf32> to vector<8x1xf32>
    %22 = vector.broadcast %21 : vector<8x1xf32> to vector<8x128xf32>
    %23 = arith.subf %19, %22 : vector<8x128xf32>
    %24 = math.exp %23 : vector<8x128xf32>
    %cst_18 = arith.constant dense<0.000000e+00> : vector<8xf32>
    %25 = vector.multi_reduction <add>, %24, %cst_18 [1] : vector<8x128xf32> to vector<8xf32>
    %26 = vector.shape_cast %25 : vector<8xf32> to vector<8x1xf32>
    %27 = tpu.reciprocal %26 : vector<8x1xf32> -> vector<8x1xf32>
    %28 = vector.broadcast %27 : vector<8x1xf32> to vector<8x128xf32>
    %29 = arith.mulf %24, %28 : vector<8x128xf32>
    %c0_19 = arith.constant 0 : index
    %c0_20 = arith.constant 0 : index
    %30 = vector.load %arg8[%c0_19, %c0_20] : memref<8x128xf32, #tpu.memory_space<vmem>>, vector<8x128xf32>
    tpu.vector_store %arg8[%c0_19, %c0_20], %29 {strides = array<i32>} : memref<8x128xf32, #tpu.memory_space<vmem>>, vector<8x128xf32>,
    return
  }
  func.func @transform_0(%arg0: i32) -> (i32, i32) {
    %c0_i32 = arith.constant 0 : i32
    %c0_i32_0 = arith.constant 0 : i32
    return %arg0, %c0_i32 : i32, i32
  }
  func.func @transform_1(%arg0: i32) -> (i32, i32) {
    %c0_i32 = arith.constant 0 : i32
    %c0_i32_0 = arith.constant 0 : i32
    %c0_i32_1 = arith.constant 0 : i32
    return %c0_i32, %c0_i32_0 : i32, i32
  }
  func.func @transform_2(%arg0: i32) -> (i32, i32) {
    %c0_i32 = arith.constant 0 : i32
    %c0_i32_0 = arith.constant 0 : i32
    %c0_i32_1 = arith.constant 0 : i32
    return %c0_i32, %c0_i32_0 : i32, i32
  }
  func.func @transform_3(%arg0: i32) -> (i32, i32) {
    %c0_i32 = arith.constant 0 : i32
    %c0_i32_0 = arith.constant 0 : i32
    %c0_i32_1 = arith.constant 0 : i32
    return %c0_i32, %c0_i32_0 : i32, i32
  }
  func.func @transform_4(%arg0: i32) -> (i32, i32) {
    %c0_i32 = arith.constant 0 : i32
    %c0_i32_0 = arith.constant 0 : i32
    %c0_i32_1 = arith.constant 0 : i32
    return %c0_i32, %c0_i32_0 : i32, i32
  }
  func.func @transform_5(%arg0: i32) -> (i32, i32) {
    %c0_i32 = arith.constant 0 : i32
    %c0_i32_0 = arith.constant 0 : i32
    %c0_i32_1 = arith.constant 0 : i32
    return %c0_i32, %c0_i32_0 : i32, i32
  }
  func.func @transform_6(%arg0: i32) -> (i32, i32) {
    %c0_i32 = arith.constant 0 : i32
    %c0_i32_0 = arith.constant 0 : i32
    %c0_i32_1 = arith.constant 0 : i32
    return %c0_i32, %c0_i32_0 : i32, i32
  }
  func.func @transform_7(%arg0: i32) -> (i32, i32) {
    %c0_i32 = arith.constant 0 : i32
    %c0_i32_0 = arith.constant 0 : i32
    return %arg0, %c0_i32 : i32, i32
  }
}

</mosaic_0001>

<bundles_post_ra>
// kernel: tpu_custom_call.1
= control target key start
LH: loop header
LB: loop body
LE: loop exit
PB: predicated region body
PF: predicated region fallthrough
CT: control target
= control target key end

     0   :  { %12 = vsyncpa [#allocation3], 0  ;;  %s910_s0 = inlined_call_operand.hbm [shape: f32[8,128], index: 0, kind: input, shape index: {}]   ;;  %s911_s1 = inlined_call_operand.hbm [shape: f32[128,128], index: 1, kind: input, shape index: {}]   ;;  %s912_s2 = inlined_call_operand.vmem [shape: f32[1,128], index: 2, kind: input, shape index: {}]   ;;  %s913_s3 = inlined_call_operand.hbm [shape: f32[128,128], index: 3, kind: input, shape index: {}]   ;;  %s914_s4 = inlined_call_operand.vmem [shape: f32[1,128], index: 4, kind: input, shape index: {}]   ;;  %s915_s5 = inlined_call_operand.hbm [shape: f32[128,128], index: 5, kind: input, shape index: {}]   ;;  %s916_s6 = inlined_call_operand.vmem [shape: f32[1,128], index: 6, kind: input, shape index: {}]   ;;  %s917_s7 = inlined_call_operand.hbm [shape: f32[8,128], index: 7, kind: output, shape index: {}]  }
   0x1   :  { %13 = vsyncpa [#allocation6], 0 }
   0x2   :  { %14 = vsyncpa [#allocation9], 0 }
   0x3   :  { %15 = vsyncpa [#allocation4], 0  ;;  %s752_s24 = smov [#allocation5]   ;;  %s634_s28 = scalar_lea.hbm %s911_s1, 2048 }
   0x4   :  { %s31_s25 = sshll.u32 %s752_s24, 4  ;;  %p635_p0 = scmp.ne.s32.totalorder %s911_s1, %s634_s28  ;;  %s32_s25 = int_to_ptr.vmem [resolvable:$true] %s31_s25 }
   0x5   :  { %p638_p1 = scmp.lt.u32.totalorder %s634_s28, %s911_s1 }
   0x7   :  { %p640_p2 = pnand %p638_p1, %p635_p0 }
   0x9   :  { %643 = shalt.err (!%p640_p2)
}
   0xa   :  { %s644_s10 = scalar_lea.vmem %s32_s25, 2048  ;;  %p649_p4 = scmp.lt.s32.totalorder %s32_s25, %s32_s25 }
   0xb   :  { %p645_p3 = scmp.ne.s32.totalorder %s32_s25, %s644_s10  ;;  %p650_p5 = scmp.lt.s32.totalorder %s644_s10, %s644_s10 }
   0xd   :  { %p651_p6 = por %p650_p5, %p649_p4 }
   0xf   :  { %p652_p7 = pnand %p651_p6, %p645_p3 }
  0x11   :  { %655 = shalt.err (!%p652_p7)
}
  0x12   :  { %s753_s11 = smov 128   ;;  %s754_s12 = smov 8  }
  0x13   :  { %37 = dma.hbm_to_vmem [thread:$0]  %s911_s1, 2048, %s32_s25, [#allocation6], %s753_s11, %s753_s11, %s754_s12  }
  0x14   :  { %s755_s15 = smov [#allocation2]   ;;  %s756_s17 = smov [#allocation7]  }
  0x15   :  { %s22_s16 = sshll.u32 %s755_s15, 4  ;;  %s45_s18 = sshll.u32 %s756_s17, 4  ;;  %s23_s16 = int_to_ptr.vmem [resolvable:$true] %s22_s16  ;;  %s46_s18 = int_to_ptr.vmem [resolvable:$true] %s45_s18 }
  0x16   :  { %s656_s21 = scalar_lea.hbm %s910_s0, 128 }
  0x17   :  { %p657_p8 = scmp.ne.s32.totalorder %s910_s0, %s656_s21  ;;  %p660_p9 = scmp.lt.u32.totalorder %s656_s21, %s910_s0 }
  0x19   :  { %p662_p10 = pnand %p660_p9, %p657_p8 }
  0x1b   :  { %665 = shalt.err (!%p662_p10)
}
  0x1c   :  { %s666_s1 = scalar_lea.vmem %s23_s16, 128  ;;  %p671_p12 = scmp.lt.s32.totalorder %s23_s16, %s23_s16 }
  0x1d   :  { %p667_p11 = scmp.ne.s32.totalorder %s23_s16, %s666_s1  ;;  %p672_p13 = scmp.lt.s32.totalorder %s666_s1, %s666_s1 }
  0x1f   :  { %p673_p0 = por %p672_p13, %p671_p12 }
  0x21   :  { %p674_p1 = pnand %p673_p0, %p667_p11 }
  0x23   :  { %677 = shalt.err (!%p674_p1)
}
  0x24   :  { %25 = dma.hbm_to_vmem [thread:$0]  %s910_s0, 128, %s23_s16, [#allocation3]  }
  0x25   :  { %s678_s30 = scalar_lea.hbm %s913_s3, 2048 }
  0x26   :  { %p679_p2 = scmp.ne.s32.totalorder %s913_s3, %s678_s30  ;;  %p682_p3 = scmp.lt.u32.totalorder %s678_s30, %s913_s3 }
  0x28   :  { %p684_p4 = pnand %p682_p3, %p679_p2 }
  0x2a   :  { %687 = shalt.err (!%p684_p4)
}
  0x2b   :  { %s688_s14 = scalar_lea.vmem %s46_s18, 2048  ;;  %p693_p6 = scmp.lt.s32.totalorder %s46_s18, %s46_s18 }
  0x2c   :  { %p689_p5 = scmp.ne.s32.totalorder %s46_s18, %s688_s14  ;;  %p694_p7 = scmp.lt.s32.totalorder %s688_s14, %s688_s14 }
  0x2e   :  { %p695_p8 = por %p694_p7, %p693_p6 }
  0x30   :  { %p696_p9 = pnand %p695_p8, %p689_p5 }
  0x32   :  { %699 = shalt.err (!%p696_p9)
}
  0x33   :  { %51 = dma.hbm_to_vmem [thread:$0]  %s913_s3, 2048, %s46_s18, [#allocation6], %s753_s11, %s753_s11, %s754_s12  }
  0x34   :  { %s757_s16 = smov [#allocation8]   ;;  %s700_s21 = scalar_lea.hbm %s915_s5, 2048 }
  0x35   :  { %s59_s17 = sshll.u32 %s757_s16, 4  ;;  %p701_p10 = scmp.ne.s32.totalorder %s915_s5, %s700_s21  ;;  %s60_s17 = int_to_ptr.vmem [resolvable:$true] %s59_s17 }
  0x36   :  { %p704_p11 = scmp.lt.u32.totalorder %s700_s21, %s915_s5 }
  0x38   :  { %p706_p12 = pnand %p704_p11, %p701_p10 }
  0x3a   :  { %709 = shalt.err (!%p706_p12)
}
  0x3b   :  { %s710_s1 = scalar_lea.vmem %s60_s17, 2048  ;;  %p715_p0 = scmp.lt.s32.totalorder %s60_s17, %s60_s17 }
  0x3c   :  { %p711_p13 = scmp.ne.s32.totalorder %s60_s17, %s710_s1  ;;  %p716_p1 = scmp.lt.s32.totalorder %s710_s1, %s710_s1 }
  0x3e   :  { %p717_p2 = por %p716_p1, %p715_p0 }
  0x40   :  { %p718_p3 = pnand %p717_p2, %p711_p13 }
  0x42   :  { %721 = shalt.err (!%p718_p3)
}
  0x43   :  { %65 = dma.hbm_to_vmem [thread:$0]  %s915_s5, 2048, %s60_s17, [#allocation9], %s753_s11, %s753_s11, %s754_s12  }
  0x44   :  { %744 = dma.done.wait [#allocation3], 128  }
  0x45   :  { %745 = vsyncadd [#allocation3], 4294967168 }
  0x46   :  { %746 = dma.done.wait [#allocation6], 4096  }
  0x47   :  { %747 = vsyncadd [#allocation6], 4294963200 }
  0x48   :  { %748 = dma.done.wait [#allocation9], 2048  }
  0x49   :  { %749 = vsyncadd [#allocation9], 4294965248  ;;  %v758_v0 = vmov 0.0|0.0   ;;  %vm759_vm0 = vmmov 0   ;;  %v760_v1 = vmov 0.0   ;;  %v81_v2 = vld [vmem:[#allocation5] sm:$0xff] }
  0x4a   :  { %548 = vmatprep.subr.bf16.mxu0 %v758_v0  ;;  %475 = vmatprep.mubr.msk.f32.mxu0 %vm759_vm0, %v760_v1  ;;  %v82_v3 = vld [vmem:[#allocation5 + $0x8] sm:$0xff]  ;;  %v83_v4 = vld [vmem:[#allocation5 + $0x10] sm:$0xff]  ;;  %v84_v6 = vld [vmem:[#allocation5 + $0x18] sm:$0xff] }
  0x4b   :  { %572 = vmatprep.subr.bf16.mxu1 %v758_v0  ;;  %510 = vmatprep.mubr.msk.f32.mxu1 %vm759_vm0, %v760_v1  ;;  %v549_v5 = vpack.c.bf16 %v82_v3, %v81_v2  ;;  %v552_v7 = vpack.c.bf16 %v84_v6, %v83_v4  ;;  %v85_v8 = vld [vmem:[#allocation5 + $0x20] sm:$0xff]  ;;  %v86_v9 = vld [vmem:[#allocation5 + $0x28] sm:$0xff]  ;;  %v177_v12 = vld [vmem:[#allocation7 + $0x10] sm:$0xff] }
  0x4c   :  { %v175_v10 = vld [vmem:[#allocation7] sm:$0xff]  ;;  %v176_v11 = vld [vmem:[#allocation7 + $0x8] sm:$0xff]  ;;  %v178_v13 = vld [vmem:[#allocation7 + $0x18] sm:$0xff]  ;;  %v555_v14 = vpack.c.bf16 %v86_v9, %v85_v8 }
  0x4d   :  { %550 = vmatpush3.bf16.msra.mxu0 %v549_v5  ;;  %v573_v15 = vpack.c.bf16 %v176_v11, %v175_v10  ;;  %v87_v16 = vld [vmem:[#allocation5 + $0x30] sm:$0xff]  ;;  %v88_v17 = vld [vmem:[#allocation5 + $0x38] sm:$0xff]  ;;  %v576_v18 = vpack.c.bf16 %v178_v13, %v177_v12  ;;  %v179_v19 = vld [vmem:[#allocation7 + $0x20] sm:$0xff] }
  0x4e   :  { %551 = vmatprep.subr.bf16.mxu0 %v758_v0  ;;  %v180_v20 = vld [vmem:[#allocation7 + $0x28] sm:$0xff]  ;;  %v558_v21 = vpack.c.bf16 %v88_v17, %v87_v16  ;;  %v89_v22 = vld [vmem:[#allocation5 + $0x40] sm:$0xff]  ;;  %v181_v25 = vld [vmem:[#allocation7 + $0x30] sm:$0xff] }
  0x4f   :  { %574 = vmatpush3.bf16.msra.mxu1 %v573_v15  ;;  %v90_v23 = vld [vmem:[#allocation5 + $0x48] sm:$0xff]  ;;  %v579_v24 = vpack.c.bf16 %v180_v20, %v179_v19  ;;  %v182_v26 = vld [vmem:[#allocation7 + $0x38] sm:$0xff]  ;;  %v91_v28 = vld [vmem:[#allocation5 + $0x50] sm:$0xff] }
  0x50   :  { %575 = vmatprep.subr.bf16.mxu1 %v758_v0  ;;  %v561_v27 = vpack.c.bf16 %v90_v23, %v89_v22  ;;  %v92_v29 = vld [vmem:[#allocation5 + $0x58] sm:$0xff]  ;;  %v582_v30 = vpack.c.bf16 %v182_v26, %v181_v25  ;;  %v183_v31 = vld [vmem:[#allocation7 + $0x40] sm:$0xff]  ;;  %v184_v32 = vld [vmem:[#allocation7 + $0x48] sm:$0xff] }
  0x51   :  { %553 = vmatpush3.bf16.msra.mxu0 %v552_v7  ;;  %v564_v33 = vpack.c.bf16 %v92_v29, %v91_v28  ;;  %v93_v34 = vld [vmem:[#allocation5 + $0x60] sm:$0xff]  ;;  %v94_v35 = vld [vmem:[#allocation5 + $0x68] sm:$0xff]  ;;  %v585_v36 = vpack.c.bf16 %v184_v32, %v183_v31  ;;  %v185_v37 = vld [vmem:[#allocation7 + $0x50] sm:$0xff] }
  0x52   :  { %554 = vmatprep.subr.bf16.mxu0 %v758_v0  ;;  %v186_v38 = vld [vmem:[#allocation7 + $0x58] sm:$0xff]  ;;  %v567_v39 = vpack.c.bf16 %v94_v35, %v93_v34  ;;  %v95_v40 = vld [vmem:[#allocation5 + $0x70] sm:$0xff]  ;;  %v187_v43 = vld [vmem:[#allocation7 + $0x60] sm:$0xff] }
  0x53   :  { %577 = vmatpush3.bf16.msra.mxu1 %v576_v18  ;;  %v96_v41 = vld [vmem:[#allocation5 + $0x78] sm:$0xff]  ;;  %v588_v42 = vpack.c.bf16 %v186_v38, %v185_v37  ;;  %v188_v44 = vld [vmem:[#allocation7 + $0x68] sm:$0xff]  ;;  %v189_v48 = vld [vmem:[#allocation7 + $0x70] sm:$0xff] }
  0x54   :  { %578 = vmatprep.subr.bf16.mxu1 %v758_v0  ;;  %v570_v45 = vpack.c.bf16 %v96_v41, %v95_v40  ;;  %v591_v46 = vpack.c.bf16 %v188_v44, %v187_v43  ;;  %v80_v47 = vld [vmem:[#allocation2] sm:$0xff]  ;;  %v269_v51 = vld [vmem:[#allocation8] sm:$0xff]  ;;  %v270_v52 = vld [vmem:[#allocation8 + $0x8] sm:$0xff] }
  0x55   :  { %556 = vmatpush3.bf16.msra.mxu0 %v555_v14  ;;  %v190_v49 = vld [vmem:[#allocation7 + $0x78] sm:$0xff]  ;;  %v271_v53 = vld [vmem:[#allocation8 + $0x10] sm:$0xff]  ;;  %v597_v54 = vpack.c.bf16 %v270_v52, %v269_v51  ;;  %v273_v57 = vld [vmem:[#allocation8 + $0x20] sm:$0xff] }
  0x56   :  { %557 = vmatprep.subr.bf16.mxu0 %v758_v0  ;;  %v594_v50 = vpack.c.bf16 %v190_v49, %v189_v48  ;;  %v272_v55 = vld [vmem:[#allocation8 + $0x18] sm:$0xff]  ;;  %v274_v58 = vld [vmem:[#allocation8 + $0x28] sm:$0xff]  ;;  %v275_v60 = vld [vmem:[#allocation8 + $0x30] sm:$0xff] }
  0x57   :  { %580 = vmatpush3.bf16.msra.mxu1 %v579_v24  ;;  %v600_v56 = vpack.c.bf16 %v272_v55, %v271_v53  ;;  %v603_v59 = vpack.c.bf16 %v274_v58, %v273_v57  ;;  %v276_v61 = vld [vmem:[#allocation8 + $0x38] sm:$0xff]  ;;  %v277_v63 = vld [vmem:[#allocation8 + $0x40] sm:$0xff]  ;;  %v279_v3 = vld [vmem:[#allocation8 + $0x50] sm:$0xff] }
  0x58   :  { %581 = vmatprep.subr.bf16.mxu1 %v758_v0  ;;  %v606_v62 = vpack.c.bf16 %v276_v61, %v275_v60  ;;  %v280_v4 = vld [vmem:[#allocation8 + $0x58] sm:$0xff]  ;;  %v281_v6 = vld [vmem:[#allocation8 + $0x60] sm:$0xff]  ;;  %v282_v7 = vld [vmem:[#allocation8 + $0x68] sm:$0xff] }
  0x59   :  { %559 = vmatpush3.bf16.msra.mxu0 %v558_v21  ;;  %v612_v5 = vpack.c.bf16 %v280_v4, %v279_v3  ;;  %v615_v8 = vpack.c.bf16 %v282_v7, %v281_v6  ;;  %v389_v9 = vld [vmem:[%s912_s2] ss:$0 sm:$0xff]  ;;  %v283_v14 = vld [vmem:[#allocation8 + $0x70] sm:$0xff] }
  0x5a   :  { %560 = vmatprep.subr.bf16.mxu0 %v758_v0  ;;  %v284_v15 = vld [vmem:[#allocation8 + $0x78] sm:$0xff] }
  0x5b   :  { %583 = vmatpush3.bf16.msra.mxu1 %v582_v30  ;;  %v618_v16 = vpack.c.bf16 %v284_v15, %v283_v14  ;;  %v390_v17 = vld [vmem:[%s914_s4] ss:$0 sm:$0xff]  ;;  %s761_s4 = smov [#allocation10]  }
  0x5c   :  { %584 = vmatprep.subr.bf16.mxu1 %v758_v0  ;;  %v391_v21 = vld [vmem:[%s916_s6] ss:$0 sm:$0xff]  ;;  %s378_s28 = sshll.u32 %s761_s4, 4  ;;  %s379_s28 = int_to_ptr.vmem [resolvable:$true] %s378_s28 }
  0x5d   :  { %562 = vmatpush3.bf16.msra.mxu0 %v561_v27  ;;  %s722_s29 = scalar_lea.vmem %s379_s28, 128  ;;  %p727_p5 = scmp.lt.s32.totalorder %s379_s28, %s379_s28 }
  0x5e   :  { %563 = vmatprep.subr.bf16.mxu0 %v758_v0  ;;  %p723_p4 = scmp.ne.s32.totalorder %s379_s28, %s722_s29  ;;  %p728_p6 = scmp.lt.s32.totalorder %s722_s29, %s722_s29 }
  0x5f   :  { %586 = vmatpush3.bf16.msra.mxu1 %v585_v36 }
  0x60   :  { %587 = vmatprep.subr.bf16.mxu1 %v758_v0  ;;  %p729_p7 = por %p728_p6, %p727_p5 }
  0x61   :  { %565 = vmatpush3.bf16.msra.mxu0 %v564_v33 }
  0x62   :  { %566 = vmatprep.subr.bf16.mxu0 %v758_v0  ;;  %p730_p8 = pnand %p729_p7, %p723_p4 }
  0x63   :  { %589 = vmatpush3.bf16.msra.mxu1 %v588_v42 }
  0x64   :  { %590 = vmatprep.subr.bf16.mxu1 %v758_v0 }
  0x65   :  { %568 = vmatpush3.bf16.msra.mxu0 %v567_v39 }
  0x66   :  { %569 = vmatprep.subr.bf16.mxu0 %v758_v0 }
  0x67   :  { %592 = vmatpush3.bf16.msra.mxu1 %v591_v46 }
  0x68   :  { %593 = vmatprep.subr.bf16.mxu1 %v758_v0 }
  0x69   :  { %571 = vmatpush3.bf16.msra.mxu0 %v570_v45 }
  0x6a   :  { %596 = vmatprep.subr.bf16.mxu0 %v758_v0 }
  0x6b   :  { %595 = vmatpush3.bf16.msra.mxu1 %v594_v50 }
  0x6c   :  { %476 = vmatmul.mubr.f32.vlgmr.msra.gmra.mrb[0].mxu0 %v80_v47 }
  0x6d   :  { %545 = vmatprep.mubr.msk.f32.mxu0 %vm759_vm0, %v760_v1  ;;  %598 = vmatpush3.bf16.msra.mxu0 %v597_v54  ;;  %v278_v1 = vld [vmem:[#allocation8 + $0x48] sm:$0xff] }
  0x6e   :  { %599 = vmatprep.subr.bf16.mxu0 %v758_v0  ;;  %v609_v2 = vpack.c.bf16 %v278_v1, %v277_v63 }
  0x71   :  { %601 = vmatpush3.bf16.msra.mxu0 %v600_v56 }
  0x72   :  { %602 = vmatprep.subr.bf16.mxu0 %v758_v0 }
  0x75   :  { %604 = vmatpush3.bf16.msra.mxu0 %v603_v59 }
  0x76   :  { %605 = vmatprep.subr.bf16.mxu0 %v758_v0 }
  0x79   :  { %607 = vmatpush3.bf16.msra.mxu0 %v606_v62 }
  0x7a   :  { %608 = vmatprep.subr.bf16.mxu0 %v758_v0 }
  0x7d   :  { %610 = vmatpush3.bf16.msra.mxu0 %v609_v2 }
  0x7e   :  { %611 = vmatprep.subr.bf16.mxu0 %v758_v0 }
  0x81   :  { %613 = vmatpush3.bf16.msra.mxu0 %v612_v5 }
  0x82   :  { %614 = vmatprep.subr.bf16.mxu0 %v758_v0 }
  0x85   :  { %616 = vmatpush3.bf16.msra.mxu0 %v615_v8 }
  0x86   :  { %617 = vmatprep.subr.bf16.mxu0 %v758_v0 }
  0x89   :  { %619 = vmatpush3.bf16.msra.mxu0 %v618_v16 }
 0x13f   :  { %v170_v10 = vpop.f32.mrb[0].mxu0 }
 0x140   :  { %v171_v11 = vadd.f32 %v389_v9, %v170_v10  ;;  %v477_v12 = vpop.f32.mrb[1].mxu0 }
 0x142   :  { %v174_v13 = vmax.f32 %v171_v11, 0.0 }
 0x144   :  { %511 = vmatmul.mubr.f32.vlgmr.msra.gmra.mrb[0].mxu1 %v174_v13 }
 0x217   :  { %v264_v18 = vpop.f32.mrb[0].mxu1 }
 0x218   :  { %v265_v19 = vadd.f32 %v390_v17, %v264_v18  ;;  %v512_v0 = vpop.f32.mrb[1].mxu1 }
 0x21a   :  { %v268_v20 = vmax.f32 %v265_v19, 0.0 }
 0x21c   :  { %546 = vmatmul.mubr.f32.vlgmr.msra.gmra.mrb[2].mxu0 %v268_v20 }
 0x2ef   :  { %v358_v22 = vpop.f32.mrb[2].mxu0 }
 0x2f0   :  { %v359_v23 = vadd.f32 %v391_v21, %v358_v22  ;;  %v547_v24 = vpop.f32.mrb[3].mxu0 }
 0x2f2   :  { %362 = vmax.xlane.f32.xlu0 %v359_v23 }
 0x37f   :  { %v363_v25 = vpop.xlane.xlu0 %362 }
 0x380   :  { %v364_v26 = vsub.f32 %v359_v23, %v363_v25 }
 0x382   :  { %v365_v27 = vmul.f32 1.442695, %v364_v26 }
 0x384   :  { %630 = vpow2.f32 %v365_v27 }
 0x38e   :  { %v631_v28 = vpop.eup %630 }
 0x38f   :  { %367 = vadd.xlane.f32.xlu0 %v631_v28 }
 0x41c   :  { %v368_v29 = vpop.xlane.xlu0 %367 }
 0x41d   :  { %632 = vrcp.f32 %v368_v29 }
 0x427   :  { %v633_v30 = vpop.eup %632 }
 0x428   :  { %v370_v31 = vmul.f32 %v633_v30, %v631_v28 }
 0x42a   :  { %371 = vst [vmem:[#allocation10] sm:$0xff] %v370_v31 }
 0x42b   :  { %733 = shalt.err (!%p730_p8)
}
 0x42c   :  { %s734_s8 = scalar_lea.hbm %s917_s7, 128 }
 0x42d   :  { %p735_p9 = scmp.ne.s32.totalorder %s917_s7, %s734_s8  ;;  %p738_p10 = scmp.lt.u32.totalorder %s734_s8, %s917_s7 }
 0x42f   :  { %p740_p11 = pnand %p738_p10, %p735_p9 }
 0x431   :  { %743 = shalt.err (!%p740_p11)
}
 0x432   :  { %381 = dma.vmem_to_hbm [thread:$0]  %s379_s28, 128, %s917_s7, [#allocation4]  }
 0x433   :  { %750 = dma.done.wait [#allocation4], 128  }
 0x434   :  { %751 = vsyncadd [#allocation4], 4294967168 }
 0x435   :  { %385 = vsyncpa [#allocation3], 1 }
 0x436   :  { %386 = vsyncpa [#allocation6], 1 }
 0x437   :  { %387 = vsyncpa [#allocation9], 1 }
 0x438   :  { %388 = vsyncpa [#allocation4], 1 }

</bundles_post_ra>
